<compile_context>
chip_gen: v7x
topology: tpu7x:2x2x1
jax: 0.10.0
libtpu: 0.0.40
codegen_flags: <defaults>
</compile_context>

<pallas_src>
import jax
import jax.numpy as jnp
from jax.experimental import pallas as pl
from jax.experimental.pallas import tpu as pltpu


def _round_up(x, m):
    return ((x + m - 1) // m) * m


def mlp_head_kernel(x_ref, w1_ref, b1_ref, w2_ref, b2_ref, o_ref):
    # Two MXU matmuls (f32 accumulation) + VPU elementwise + row reduction.
    x = x_ref[...]                                                   # (tb, D_in)
    h = jnp.dot(x, w1_ref[...], preferred_element_type=jnp.float32)  # (tb, D_hid)
    h = jnp.maximum(h + b1_ref[...], 0.0)                            # bias + ReLU
    y = jnp.dot(h.astype(w2_ref.dtype), w2_ref[...],
                preferred_element_type=jnp.float32)                  # (tb, D_out)
    y = y + b2_ref[...]
    # F.normalize(dim=-1): y / max(||y||_2, 1e-12).
    # sqrt(max(s, eps^2)) == max(sqrt(s), eps), so rsqrt on the clamped
    # sum-of-squares is exactly 1/max(||y||, eps) and lowers to the EUP.
    sumsq = jnp.sum(y * y, axis=-1, keepdims=True)                   # (tb, 1)
    inv_norm = jax.lax.rsqrt(jnp.maximum(sumsq, 1e-24))
    o_ref[...] = (y * inv_norm).astype(o_ref.dtype)


def mlp_head(x, w1, b1, w2, b2, *, tb=256):
    """x: (B, D_in); w1: (D_in, D_hid); b1: (1, D_hid); w2: (D_hid, D_out); b2: (1, D_out)."""
    B, D_in = x.shape
    D_hid = w1.shape[1]
    D_out = w2.shape[1]
    if b1.ndim == 1:
        b1 = b1.reshape(1, -1)
    if b2.ndim == 1:
        b2 = b2.reshape(1, -1)

    # Batch tile: large enough to fill the MXU / amortize per-grid-step
    # overhead, but never larger than the sublane-padded batch itself.
    tb_eff = min(_round_up(tb, 8), _round_up(B, 8))
    B_pad = _round_up(B, tb_eff)
    if B_pad != B:
        x = jnp.pad(x, ((0, B_pad - B), (0, 0)))
    grid = (B_pad // tb_eff,)

    # VMEM budget: x/out tiles double-buffered, weights/biases single-buffered,
    # plus f32 intermediates; 1.5x headroom, clamped to a sane range.
    w_isz = jnp.dtype(w1.dtype).itemsize
    x_isz = jnp.dtype(x.dtype).itemsize
    est_vmem = (
        2 * tb_eff * D_in * x_isz            # x tile (double buffered)
        + 2 * tb_eff * D_out * x_isz         # out tile (double buffered)
        + (D_in * D_hid + D_hid) * w_isz     # W1 + b1 (single buffered)
        + (D_hid * D_out + D_out) * w_isz    # W2 + b2 (single buffered)
        + tb_eff * (D_hid + D_out) * 4       # f32 intermediates
    )
    vmem_limit = int(min(max(est_vmem * 3 // 2, 32 * 1024 * 1024),
                         100 * 1024 * 1024))

    resident = pl.Buffered(1)  # constant index_map -> no double buffering needed

    out = pl.pallas_call(
        mlp_head_kernel,
        out_shape=jax.ShapeDtypeStruct((B_pad, D_out), x.dtype),
        grid_spec=pltpu.PrefetchScalarGridSpec(
            num_scalar_prefetch=0,
            grid=grid,
            in_specs=[
                pl.BlockSpec((tb_eff, D_in), lambda i: (i, 0)),          # x tile
                pl.BlockSpec((D_in, D_hid), lambda i: (0, 0),
                             pipeline_mode=resident),                    # W1
                pl.BlockSpec((1, D_hid), lambda i: (0, 0),
                             pipeline_mode=resident),                    # b1
                pl.BlockSpec((D_hid, D_out), lambda i: (0, 0),
                             pipeline_mode=resident),                    # W2
                pl.BlockSpec((1, D_out), lambda i: (0, 0),
                             pipeline_mode=resident),                    # b2
            ],
            out_specs=pl.BlockSpec((tb_eff, D_out), lambda i: (i, 0)),
        ),
        compiler_params=pltpu.CompilerParams(
            dimension_semantics=("parallel",),
            vmem_limit_bytes=vmem_limit,
        ),
    )(x, w1, b1, w2, b2)

    return out[:B] if B_pad != B else out


def mlp_head_ref(x, w1, b1, w2, b2):
    h = jnp.maximum(x @ w1 + b1, 0.0)
    y = h @ w2 + b2
    norm = jnp.sqrt(jnp.sum(y * y, axis=-1, keepdims=True))
    return y / jnp.maximum(norm, 1e-12)


if __name__ == "__main__":
    key = jax.random.PRNGKey(0)
    kx, k1, kb1, k2, kb2, kx2 = jax.random.split(key, 6)

    # Small shapes consistent with MlpHead(input_dim, hidden_dim, output_dim).
    B, D_in, D_hid, D_out = 8, 128, 128, 128

    x = jax.random.normal(kx, (B, D_in), dtype=jnp.float32)
    # Deterministic synthetic parameters (not a checkpoint load).
    w1 = jax.random.normal(k1, (D_in, D_hid), dtype=jnp.float32) * (1.0 / jnp.sqrt(D_in))
    b1 = jax.random.normal(kb1, (1, D_hid), dtype=jnp.float32) * 0.01
    w2 = jax.random.normal(k2, (D_hid, D_out), dtype=jnp.float32) * (1.0 / jnp.sqrt(D_hid))
    b2 = jax.random.normal(kb2, (1, D_out), dtype=jnp.float32) * 0.01

    out = jax.block_until_ready(mlp_head(x, w1, b1, w2, b2))
    ref = mlp_head_ref(x, w1, b1, w2, b2)
    assert out.shape == (B, D_out)
    assert jnp.allclose(out, ref, atol=1e-5, rtol=1e-5), "mismatch vs reference (small B)"

    # Ragged batch: exercises the padded, multi-step parallel grid + large tile.
    B2 = 300
    x2 = jax.random.normal(kx2, (B2, D_in), dtype=jnp.float32)
    out2 = jax.block_until_ready(mlp_head(x2, w1, b1, w2, b2, tb=256))
    ref2 = mlp_head_ref(x2, w1, b1, w2, b2)
    assert out2.shape == (B2, D_out)
    assert jnp.allclose(out2, ref2, atol=1e-5, rtol=1e-5), "mismatch vs reference (ragged B)"

    print("KERNEL_OK")
</pallas_src>

<mosaic_0001>
module attributes {stable_mosaic.version = 11 : i64} {
  func.func @mlp_head_kernel(%arg0: i32, %arg1: memref<8x128xf32, #tpu.memory_space<vmem>>, %arg2: memref<128x128xf32, #tpu.memory_space<vmem>>, %arg3: memref<1x128xf32, #tpu.memory_space<vmem>>, %arg4: memref<128x128xf32, #tpu.memory_space<vmem>>, %arg5: memref<1x128xf32, #tpu.memory_space<vmem>>, %arg6: memref<8x128xf32, #tpu.memory_space<vmem>>) attributes {dimension_semantics = [#tpu.dimension_semantics<parallel>], iteration_bounds = array<i64: 1>, scalar_prefetch = 0 : i64, scratch_operands = 0 : i64, tpu.core_type = #tpu.core_type<tc>, window_params = [{transform_indices = @transform_0, window_bounds = array<i64: 8, 128>}, {pipeline_mode = #tpu.pipeline_mode<synchronous>, transform_indices = @transform_1, window_bounds = array<i64: 128, 128>}, {pipeline_mode = #tpu.pipeline_mode<synchronous>, transform_indices = @transform_2, window_bounds = array<i64: 1, 128>}, {pipeline_mode = #tpu.pipeline_mode<synchronous>, transform_indices = @transform_3, window_bounds = array<i64: 128, 128>}, {pipeline_mode = #tpu.pipeline_mode<synchronous>, transform_indices = @transform_4, window_bounds = array<i64: 1, 128>}, {transform_indices = @transform_5, window_bounds = array<i64: 8, 128>}]} {
    %c0 = arith.constant 0 : index
    %c0_0 = arith.constant 0 : index
    %0 = vector.load %arg1[%c0, %c0_0] : memref<8x128xf32, #tpu.memory_space<vmem>>, vector<8x128xf32>
    %c0_1 = arith.constant 0 : index
    %c0_2 = arith.constant 0 : index
    %1 = vector.load %arg2[%c0_1, %c0_2] : memref<128x128xf32, #tpu.memory_space<vmem>>, vector<128x128xf32>
    %cst = arith.constant dense<0.000000e+00> : vector<8x128xf32>
    %2 = tpu.matmul %0, %1, %cst {dimension_numbers = #tpu.dot_dimension_numbers<[1], [0], [0], [1], [0, 0, 1, 1], [], []>} : vector<8x128xf32>, vector<128x128xf32>, vector<8x128xf32> -> vector<8x128xf32>
    %c0_3 = arith.constant 0 : index
    %c0_4 = arith.constant 0 : index
    %3 = vector.load %arg3[%c0_3, %c0_4] : memref<1x128xf32, #tpu.memory_space<vmem>>, vector<1x128xf32>
    %4 = vector.broadcast %3 : vector<1x128xf32> to vector<8x128xf32>
    %5 = arith.addf %2, %4 : vector<8x128xf32>
    %cst_5 = arith.constant 0.000000e+00 : f32
    %6 = vector.broadcast %cst_5 : f32 to vector<8x128xf32>
    %7 = arith.maximumf %5, %6 : vector<8x128xf32>
    %c0_6 = arith.constant 0 : index
    %c0_7 = arith.constant 0 : index
    %8 = vector.load %arg4[%c0_6, %c0_7] : memref<128x128xf32, #tpu.memory_space<vmem>>, vector<128x128xf32>
    %cst_8 = arith.constant dense<0.000000e+00> : vector<8x128xf32>
    %9 = tpu.matmul %7, %8, %cst_8 {dimension_numbers = #tpu.dot_dimension_numbers<[1], [0], [0], [1], [0, 0, 1, 1], [], []>} : vector<8x128xf32>, vector<128x128xf32>, vector<8x128xf32> -> vector<8x128xf32>
    %c0_9 = arith.constant 0 : index
    %c0_10 = arith.constant 0 : index
    %10 = vector.load %arg5[%c0_9, %c0_10] : memref<1x128xf32, #tpu.memory_space<vmem>>, vector<1x128xf32>
    %11 = vector.broadcast %10 : vector<1x128xf32> to vector<8x128xf32>
    %12 = arith.addf %9, %11 : vector<8x128xf32>
    %13 = arith.mulf %12, %12 : vector<8x128xf32>
    %cst_11 = arith.constant dense<0.000000e+00> : vector<8xf32>
    %14 = vector.multi_reduction <add>, %13, %cst_11 [1] : vector<8x128xf32> to vector<8xf32>
    %15 = vector.shape_cast %14 : vector<8xf32> to vector<8x1xf32>
    %cst_12 = arith.constant 1.000000e-24 : f32
    %16 = vector.broadcast %cst_12 : f32 to vector<8x1xf32>
    %17 = arith.maximumf %15, %16 : vector<8x1xf32>
    %18 = math.rsqrt %17 : vector<8x1xf32>
    %19 = vector.broadcast %18 : vector<8x1xf32> to vector<8x128xf32>
    %20 = arith.mulf %12, %19 : vector<8x128xf32>
    %c0_13 = arith.constant 0 : index
    %c0_14 = arith.constant 0 : index
    %21 = vector.load %arg6[%c0_13, %c0_14] : memref<8x128xf32, #tpu.memory_space<vmem>>, vector<8x128xf32>
    tpu.vector_store %arg6[%c0_13, %c0_14], %20 {strides = array<i32>} : memref<8x128xf32, #tpu.memory_space<vmem>>, vector<8x128xf32>,
    return
  }
  func.func @transform_0(%arg0: i32) -> (i32, i32) {
    %c0_i32 = arith.constant 0 : i32
    %c0_i32_0 = arith.constant 0 : i32
    return %arg0, %c0_i32 : i32, i32
  }
  func.func @transform_1(%arg0: i32) -> (i32, i32) {
    %c0_i32 = arith.constant 0 : i32
    %c0_i32_0 = arith.constant 0 : i32
    %c0_i32_1 = arith.constant 0 : i32
    return %c0_i32, %c0_i32_0 : i32, i32
  }
  func.func @transform_2(%arg0: i32) -> (i32, i32) {
    %c0_i32 = arith.constant 0 : i32
    %c0_i32_0 = arith.constant 0 : i32
    %c0_i32_1 = arith.constant 0 : i32
    return %c0_i32, %c0_i32_0 : i32, i32
  }
  func.func @transform_3(%arg0: i32) -> (i32, i32) {
    %c0_i32 = arith.constant 0 : i32
    %c0_i32_0 = arith.constant 0 : i32
    %c0_i32_1 = arith.constant 0 : i32
    return %c0_i32, %c0_i32_0 : i32, i32
  }
  func.func @transform_4(%arg0: i32) -> (i32, i32) {
    %c0_i32 = arith.constant 0 : i32
    %c0_i32_0 = arith.constant 0 : i32
    %c0_i32_1 = arith.constant 0 : i32
    return %c0_i32, %c0_i32_0 : i32, i32
  }
  func.func @transform_5(%arg0: i32) -> (i32, i32) {
    %c0_i32 = arith.constant 0 : i32
    %c0_i32_0 = arith.constant 0 : i32
    return %arg0, %c0_i32 : i32, i32
  }
}

</mosaic_0001>

<bundles_post_ra>
// kernel: tpu_custom_call.1
= control target key start
LH: loop header
LB: loop body
LE: loop exit
PB: predicated region body
PF: predicated region fallthrough
CT: control target
= control target key end

     0   :  { %10 = vsyncpa [#allocation3], 0  ;;  %s645_s0 = inlined_call_operand.hbm [shape: f32[8,128], index: 0, kind: input, shape index: {}]   ;;  %s646_s1 = inlined_call_operand.hbm [shape: f32[128,128], index: 1, kind: input, shape index: {}]   ;;  %s647_s2 = inlined_call_operand.vmem [shape: f32[1,128], index: 2, kind: input, shape index: {}]   ;;  %s648_s3 = inlined_call_operand.hbm [shape: f32[128,128], index: 3, kind: input, shape index: {}]   ;;  %s649_s4 = inlined_call_operand.vmem [shape: f32[1,128], index: 4, kind: input, shape index: {}]   ;;  %s650_s5 = inlined_call_operand.hbm [shape: f32[8,128], index: 5, kind: output, shape index: {}]  }
   0x1   :  { %11 = vsyncpa [#allocation6], 0 }
   0x2   :  { %12 = vsyncpa [#allocation4], 0  ;;  %s530_s18 = smov [#allocation5]   ;;  %s436_s22 = scalar_lea.hbm %s646_s1, 2048 }
   0x3   :  { %s28_s19 = sshll.u32 %s530_s18, 4  ;;  %p437_p0 = scmp.ne.s32.totalorder %s646_s1, %s436_s22  ;;  %s29_s19 = int_to_ptr.vmem [resolvable:$true] %s28_s19 }
   0x4   :  { %p440_p1 = scmp.lt.u32.totalorder %s436_s22, %s646_s1 }
   0x6   :  { %p442_p2 = pnand %p440_p1, %p437_p0 }
   0x8   :  { %445 = shalt.err (!%p442_p2)
}
   0x9   :  { %s446_s27 = scalar_lea.vmem %s29_s19, 2048  ;;  %p451_p4 = scmp.lt.s32.totalorder %s29_s19, %s29_s19 }
   0xa   :  { %p447_p3 = scmp.ne.s32.totalorder %s29_s19, %s446_s27  ;;  %p452_p5 = scmp.lt.s32.totalorder %s446_s27, %s446_s27 }
   0xc   :  { %p453_p6 = por %p452_p5, %p451_p4 }
   0xe   :  { %p454_p7 = pnand %p453_p6, %p447_p3 }
  0x10   :  { %457 = shalt.err (!%p454_p7)
}
  0x11   :  { %s531_s28 = smov 128   ;;  %s532_s29 = smov 8  }
  0x12   :  { %34 = dma.hbm_to_vmem [thread:$0]  %s646_s1, 2048, %s29_s19, [#allocation6], %s531_s28, %s531_s28, %s532_s29  }
  0x13   :  { %s533_s7 = smov [#allocation2]   ;;  %s534_s9 = smov [#allocation7]  }
  0x14   :  { %s19_s8 = sshll.u32 %s533_s7, 4  ;;  %s42_s10 = sshll.u32 %s534_s9, 4  ;;  %s20_s8 = int_to_ptr.vmem [resolvable:$true] %s19_s8  ;;  %s43_s10 = int_to_ptr.vmem [resolvable:$true] %s42_s10 }
  0x15   :  { %s458_s13 = scalar_lea.hbm %s645_s0, 128 }
  0x16   :  { %p459_p8 = scmp.ne.s32.totalorder %s645_s0, %s458_s13  ;;  %p462_p9 = scmp.lt.u32.totalorder %s458_s13, %s645_s0 }
  0x18   :  { %p464_p10 = pnand %p462_p9, %p459_p8 }
  0x1a   :  { %467 = shalt.err (!%p464_p10)
}
  0x1b   :  { %s468_s1 = scalar_lea.vmem %s20_s8, 128  ;;  %p473_p12 = scmp.lt.s32.totalorder %s20_s8, %s20_s8 }
  0x1c   :  { %p469_p11 = scmp.ne.s32.totalorder %s20_s8, %s468_s1  ;;  %p474_p13 = scmp.lt.s32.totalorder %s468_s1, %s468_s1 }
  0x1e   :  { %p475_p0 = por %p474_p13, %p473_p12 }
  0x20   :  { %p476_p1 = pnand %p475_p0, %p469_p11 }
  0x22   :  { %479 = shalt.err (!%p476_p1)
}
  0x23   :  { %22 = dma.hbm_to_vmem [thread:$0]  %s645_s0, 128, %s20_s8, [#allocation3]  }
  0x24   :  { %s480_s22 = scalar_lea.hbm %s648_s3, 2048 }
  0x25   :  { %p481_p2 = scmp.ne.s32.totalorder %s648_s3, %s480_s22  ;;  %p484_p3 = scmp.lt.u32.totalorder %s480_s22, %s648_s3 }
  0x27   :  { %p486_p4 = pnand %p484_p3, %p481_p2 }
  0x29   :  { %489 = shalt.err (!%p486_p4)
}
  0x2a   :  { %s490_s27 = scalar_lea.vmem %s43_s10, 2048  ;;  %p495_p6 = scmp.lt.s32.totalorder %s43_s10, %s43_s10 }
  0x2b   :  { %p491_p5 = scmp.ne.s32.totalorder %s43_s10, %s490_s27  ;;  %p496_p7 = scmp.lt.s32.totalorder %s490_s27, %s490_s27 }
  0x2d   :  { %p497_p8 = por %p496_p7, %p495_p6 }
  0x2f   :  { %p498_p9 = pnand %p497_p8, %p491_p5 }
  0x31   :  { %501 = shalt.err (!%p498_p9)
}
  0x32   :  { %48 = dma.hbm_to_vmem [thread:$0]  %s648_s3, 2048, %s43_s10, [#allocation6], %s531_s28, %s531_s28, %s532_s29  }
  0x33   :  { %524 = dma.done.wait [#allocation3], 128  }
  0x34   :  { %525 = vsyncadd [#allocation3], 4294967168 }
  0x35   :  { %526 = dma.done.wait [#allocation6], 4096  }
  0x36   :  { %527 = vsyncadd [#allocation6], 4294963200  ;;  %v535_v0 = vmov 0.0|0.0   ;;  %vm536_vm0 = vmmov 0   ;;  %v537_v1 = vmov 0.0   ;;  %v61_v2 = vld [vmem:[#allocation5] sm:$0xff] }
  0x37   :  { %377 = vmatprep.subr.bf16.mxu0 %v535_v0  ;;  %339 = vmatprep.mubr.msk.f32.mxu0 %vm536_vm0, %v537_v1  ;;  %v62_v3 = vld [vmem:[#allocation5 + $0x8] sm:$0xff]  ;;  %v63_v4 = vld [vmem:[#allocation5 + $0x10] sm:$0xff]  ;;  %v64_v6 = vld [vmem:[#allocation5 + $0x18] sm:$0xff]  ;;  %s538_s7 = smov [#allocation8]  }
  0x38   :  { %401 = vmatprep.subr.bf16.mxu1 %v535_v0  ;;  %374 = vmatprep.mubr.msk.f32.mxu1 %vm536_vm0, %v537_v1  ;;  %v378_v5 = vpack.c.bf16 %v62_v3, %v61_v2  ;;  %v381_v7 = vpack.c.bf16 %v64_v6, %v63_v4  ;;  %v65_v8 = vld [vmem:[#allocation5 + $0x20] sm:$0xff]  ;;  %v66_v9 = vld [vmem:[#allocation5 + $0x28] sm:$0xff]  ;;  %v157_v12 = vld [vmem:[#allocation7 + $0x10] sm:$0xff]  ;;  %s261_s8 = sshll.u32 %s538_s7, 4  ;;  %s262_s8 = int_to_ptr.vmem [resolvable:$true] %s261_s8 }
  0x39   :  { %v155_v10 = vld [vmem:[#allocation7] sm:$0xff]  ;;  %v156_v11 = vld [vmem:[#allocation7 + $0x8] sm:$0xff]  ;;  %v158_v13 = vld [vmem:[#allocation7 + $0x18] sm:$0xff]  ;;  %v384_v14 = vpack.c.bf16 %v66_v9, %v65_v8  ;;  %p507_p11 = scmp.lt.s32.totalorder %s262_s8, %s262_s8 }
  0x3a   :  { %379 = vmatpush3.bf16.msra.mxu0 %v378_v5  ;;  %v402_v15 = vpack.c.bf16 %v156_v11, %v155_v10  ;;  %v67_v16 = vld [vmem:[#allocation5 + $0x30] sm:$0xff]  ;;  %v68_v17 = vld [vmem:[#allocation5 + $0x38] sm:$0xff]  ;;  %v405_v18 = vpack.c.bf16 %v158_v13, %v157_v12  ;;  %v159_v19 = vld [vmem:[#allocation7 + $0x20] sm:$0xff] }
  0x3b   :  { %380 = vmatprep.subr.bf16.mxu0 %v535_v0  ;;  %v160_v20 = vld [vmem:[#allocation7 + $0x28] sm:$0xff]  ;;  %v387_v21 = vpack.c.bf16 %v68_v17, %v67_v16  ;;  %v69_v22 = vld [vmem:[#allocation5 + $0x40] sm:$0xff]  ;;  %v161_v25 = vld [vmem:[#allocation7 + $0x30] sm:$0xff] }
  0x3c   :  { %403 = vmatpush3.bf16.msra.mxu1 %v402_v15  ;;  %v70_v23 = vld [vmem:[#allocation5 + $0x48] sm:$0xff]  ;;  %v408_v24 = vpack.c.bf16 %v160_v20, %v159_v19  ;;  %v162_v26 = vld [vmem:[#allocation7 + $0x38] sm:$0xff]  ;;  %v71_v28 = vld [vmem:[#allocation5 + $0x50] sm:$0xff] }
  0x3d   :  { %404 = vmatprep.subr.bf16.mxu1 %v535_v0  ;;  %v390_v27 = vpack.c.bf16 %v70_v23, %v69_v22  ;;  %v72_v29 = vld [vmem:[#allocation5 + $0x58] sm:$0xff]  ;;  %v411_v30 = vpack.c.bf16 %v162_v26, %v161_v25  ;;  %v163_v31 = vld [vmem:[#allocation7 + $0x40] sm:$0xff]  ;;  %v164_v32 = vld [vmem:[#allocation7 + $0x48] sm:$0xff] }
  0x3e   :  { %382 = vmatpush3.bf16.msra.mxu0 %v381_v7  ;;  %v393_v33 = vpack.c.bf16 %v72_v29, %v71_v28  ;;  %v73_v34 = vld [vmem:[#allocation5 + $0x60] sm:$0xff]  ;;  %v74_v35 = vld [vmem:[#allocation5 + $0x68] sm:$0xff]  ;;  %v414_v36 = vpack.c.bf16 %v164_v32, %v163_v31  ;;  %v165_v37 = vld [vmem:[#allocation7 + $0x50] sm:$0xff] }
  0x3f   :  { %383 = vmatprep.subr.bf16.mxu0 %v535_v0  ;;  %v166_v38 = vld [vmem:[#allocation7 + $0x58] sm:$0xff]  ;;  %v396_v39 = vpack.c.bf16 %v74_v35, %v73_v34  ;;  %v75_v40 = vld [vmem:[#allocation5 + $0x70] sm:$0xff]  ;;  %v167_v43 = vld [vmem:[#allocation7 + $0x60] sm:$0xff] }
  0x40   :  { %406 = vmatpush3.bf16.msra.mxu1 %v405_v18  ;;  %v76_v41 = vld [vmem:[#allocation5 + $0x78] sm:$0xff]  ;;  %v417_v42 = vpack.c.bf16 %v166_v38, %v165_v37  ;;  %v168_v44 = vld [vmem:[#allocation7 + $0x68] sm:$0xff]  ;;  %v169_v48 = vld [vmem:[#allocation7 + $0x70] sm:$0xff] }
  0x41   :  { %407 = vmatprep.subr.bf16.mxu1 %v535_v0  ;;  %v399_v45 = vpack.c.bf16 %v76_v41, %v75_v40  ;;  %v420_v46 = vpack.c.bf16 %v168_v44, %v167_v43  ;;  %v60_v47 = vld [vmem:[#allocation2] sm:$0xff] }
  0x42   :  { %385 = vmatpush3.bf16.msra.mxu0 %v384_v14  ;;  %v170_v49 = vld [vmem:[#allocation7 + $0x78] sm:$0xff] }
  0x43   :  { %386 = vmatprep.subr.bf16.mxu0 %v535_v0  ;;  %v423_v50 = vpack.c.bf16 %v170_v49, %v169_v48  ;;  %v271_v51 = vld [vmem:[%s647_s2] ss:$0 sm:$0xff]  ;;  %s502_s2 = scalar_lea.vmem %s262_s8, 128 }
  0x44   :  { %409 = vmatpush3.bf16.msra.mxu1 %v408_v24  ;;  %v272_v56 = vld [vmem:[%s649_s4] ss:$0 sm:$0xff]  ;;  %p503_p10 = scmp.ne.s32.totalorder %s262_s8, %s502_s2  ;;  %p508_p12 = scmp.lt.s32.totalorder %s502_s2, %s502_s2 }
  0x45   :  { %410 = vmatprep.subr.bf16.mxu1 %v535_v0 }
  0x46   :  { %388 = vmatpush3.bf16.msra.mxu0 %v387_v21  ;;  %p509_p13 = por %p508_p12, %p507_p11 }
  0x47   :  { %389 = vmatprep.subr.bf16.mxu0 %v535_v0 }
  0x48   :  { %412 = vmatpush3.bf16.msra.mxu1 %v411_v30  ;;  %p510_p0 = pnand %p509_p13, %p503_p10 }
  0x49   :  { %413 = vmatprep.subr.bf16.mxu1 %v535_v0 }
  0x4a   :  { %391 = vmatpush3.bf16.msra.mxu0 %v390_v27 }
  0x4b   :  { %392 = vmatprep.subr.bf16.mxu0 %v535_v0 }
  0x4c   :  { %415 = vmatpush3.bf16.msra.mxu1 %v414_v36 }
  0x4d   :  { %416 = vmatprep.subr.bf16.mxu1 %v535_v0 }
  0x4e   :  { %394 = vmatpush3.bf16.msra.mxu0 %v393_v33 }
  0x4f   :  { %395 = vmatprep.subr.bf16.mxu0 %v535_v0 }
  0x50   :  { %418 = vmatpush3.bf16.msra.mxu1 %v417_v42 }
  0x51   :  { %419 = vmatprep.subr.bf16.mxu1 %v535_v0 }
  0x52   :  { %397 = vmatpush3.bf16.msra.mxu0 %v396_v39 }
  0x53   :  { %398 = vmatprep.subr.bf16.mxu0 %v535_v0 }
  0x54   :  { %421 = vmatpush3.bf16.msra.mxu1 %v420_v46 }
  0x55   :  { %422 = vmatprep.subr.bf16.mxu1 %v535_v0 }
  0x56   :  { %400 = vmatpush3.bf16.msra.mxu0 %v399_v45 }
  0x58   :  { %424 = vmatpush3.bf16.msra.mxu1 %v423_v50 }
  0x59   :  { %340 = vmatmul.mubr.f32.vlgmr.msra.gmra.mrb[0].mxu0 %v60_v47 }
 0x12c   :  { %v150_v52 = vpop.f32.mrb[0].mxu0 }
 0x12d   :  { %v151_v53 = vadd.f32 %v271_v51, %v150_v52  ;;  %v341_v54 = vpop.f32.mrb[1].mxu0 }
 0x12f   :  { %v154_v55 = vmax.f32 %v151_v53, 0.0 }
 0x131   :  { %375 = vmatmul.mubr.f32.vlgmr.msra.gmra.mrb[0].mxu1 %v154_v55 }
 0x204   :  { %v244_v57 = vpop.f32.mrb[0].mxu1 }
 0x205   :  { %v245_v58 = vadd.f32 %v272_v56, %v244_v57  ;;  %v376_v59 = vpop.f32.mrb[1].mxu1 }
 0x207   :  { %v248_v60 = vmul.f32 %v245_v58, %v245_v58 }
 0x209   :  { %249 = vadd.xlane.f32.xlu0 %v248_v60 }
 0x296   :  { %v250_v61 = vpop.xlane.xlu0 %249 }
 0x297   :  { %v251_v62 = vmax.f32 %v250_v61, 1e-24 }
 0x299   :  { %434 = vrsqrt.f32 %v251_v62 }
 0x2a3   :  { %v435_v63 = vpop.eup %434 }
 0x2a4   :  { %v253_v0 = vmul.f32 %v435_v63, %v245_v58 }
 0x2a6   :  { %254 = vst [vmem:[#allocation8] sm:$0xff] %v253_v0 }
 0x2a7   :  { %513 = shalt.err (!%p510_p0)
}
 0x2a8   :  { %s514_s10 = scalar_lea.hbm %s650_s5, 128 }
 0x2a9   :  { %p515_p1 = scmp.ne.s32.totalorder %s650_s5, %s514_s10  ;;  %p518_p2 = scmp.lt.u32.totalorder %s514_s10, %s650_s5 }
 0x2ab   :  { %p520_p3 = pnand %p518_p2, %p515_p1 }
 0x2ad   :  { %523 = shalt.err (!%p520_p3)
}
 0x2ae   :  { %264 = dma.vmem_to_hbm [thread:$0]  %s262_s8, 128, %s650_s5, [#allocation4]  }
 0x2af   :  { %528 = dma.done.wait [#allocation4], 128  }
 0x2b0   :  { %529 = vsyncadd [#allocation4], 4294967168 }
 0x2b1   :  { %268 = vsyncpa [#allocation3], 1 }
 0x2b2   :  { %269 = vsyncpa [#allocation6], 1 }
 0x2b3   :  { %270 = vsyncpa [#allocation4], 1 }

</bundles_post_ra>
